<compile_context>
chip_gen: v7x
topology: tpu7x:2x2x1
jax: 0.10.0
libtpu: 0.0.40
codegen_flags: <defaults>
</compile_context>

<pallas_src>
import functools

import jax
import jax.numpy as jnp
from jax.experimental import pallas as pl
from jax.experimental.pallas import tpu as pltpu

HIDDEN = 256    # fc1 / fc2 width, as in nn.Linear(..., 256)
OUT_PAD = 8     # fc3 output padded 1 -> 8 columns (lane-masked but tiny store)
MAX_TB = 1024   # max batch-tile rows (~2-3 MiB VMEM incl. double buffers)
MIN_TB = 16     # sublane-friendly minimum (covers bf16 16-row packing)


def _round_up(n, m):
    return (n + m - 1) // m * m


def _cdiv(a, b):
    return (a + b - 1) // b


# ---------------------------------------------------------------------------
# Kernel: one batch tile of   q = fc3(relu(fc2(relu(fc1([obs, act])))))
# fc1 is evaluated as x @ W1[:obs] + a @ W1[obs:] so no concat is needed.
# Weights are pre-transposed to (in, out); biases are (1, out) rows.
# ---------------------------------------------------------------------------
def qnetwork_kernel(x_ref, a_ref, w1x_ref, w1a_ref, b1_ref,
                    w2_ref, b2_ref, w3_ref, b3_ref, out_ref):
    cdt = w2_ref.dtype                       # MXU operand dtype (bf16 by default)
    # fc1 + relu (f32 accumulation, f32 elementwise)
    h1 = (jnp.dot(x_ref[...].astype(cdt), w1x_ref[...],
                  preferred_element_type=jnp.float32)
          + jnp.dot(a_ref[...].astype(cdt), w1a_ref[...],
                    preferred_element_type=jnp.float32))
    h1 = jnp.maximum(h1 + b1_ref[...], 0.0)
    # fc2 + relu
    h2 = jnp.dot(h1.astype(cdt), w2_ref[...], preferred_element_type=jnp.float32)
    h2 = jnp.maximum(h2 + b2_ref[...], 0.0)
    # fc3 (output padded 1 -> 8 columns)
    q = jnp.dot(h2.astype(cdt), w3_ref[...], preferred_element_type=jnp.float32)
    out_ref[...] = q + b3_ref[...]


# ---------------------------------------------------------------------------
# Parameter handling
# ---------------------------------------------------------------------------
def init_params(key, obs_dim, act_dim, hidden=HIDDEN):
    """nn.Linear-style init U(-1/sqrt(fan_in), +1/sqrt(fan_in)).
    Weights stored pre-transposed as (in_features, out_features)."""
    ks = jax.random.split(key, 6)

    def linear(kw, kb, fan_in, fan_out):
        bound = 1.0 / jnp.sqrt(fan_in)
        w = jax.random.uniform(kw, (fan_in, fan_out), jnp.float32, -bound, bound)
        b = jax.random.uniform(kb, (fan_out,), jnp.float32, -bound, bound)
        return w, b

    in_dim = obs_dim + act_dim
    w1, b1 = linear(ks[0], ks[1], in_dim, hidden)
    w2, b2 = linear(ks[2], ks[3], hidden, hidden)
    w3, b3 = linear(ks[4], ks[5], hidden, 1)
    return (w1, b1, w2, b2, w3, b3)


def prepare_params(params, obs_dim, param_dtype=jnp.bfloat16):
    """One-time split / pad / cast of the parameters for the kernel.
      * w1 split into obs and act halves (kernel sums the two fc1 partial dots).
      * fc3 output padded 1 -> OUT_PAD columns.
      * weights cast to `param_dtype` (bf16 for the MXU); biases stay f32.
    Returns (padded_params, n_out)."""
    w1, b1, w2, b2, w3, b3 = params
    n_out = w3.shape[1]
    n_pad = _round_up(n_out, OUT_PAD)

    w1x = w1[:obs_dim].astype(param_dtype)
    w1a = w1[obs_dim:].astype(param_dtype)
    w2p = w2.astype(param_dtype)
    w3p = jnp.pad(w3, ((0, 0), (0, n_pad - n_out))).astype(param_dtype)
    b1p = b1.reshape(1, -1).astype(jnp.float32)
    b2p = b2.reshape(1, -1).astype(jnp.float32)
    b3p = jnp.pad(b3.reshape(1, -1), ((0, 0), (0, n_pad - n_out))).astype(jnp.float32)
    return (w1x, w1a, b1p, w2p, b2p, w3p, b3p), n_out


# ---------------------------------------------------------------------------
# Wrapper: cast + batch pad, batch-tiled pallas_call, slice back to (B, 1)
# ---------------------------------------------------------------------------
@functools.partial(jax.jit, static_argnames=("n_out",))
def qnetwork_forward(x, a, padded_params, *, n_out):
    w1x, w1a, b1, w2, b2, w3, b3 = padded_params
    B, obs_dim = x.shape
    act_dim = a.shape[1]
    n_pad = w3.shape[1]
    cdt = w1x.dtype

    # Batch tile: as large as possible (per-grid-step overhead dominates small
    # tiles), but keep >= 2 grid steps when B allows so v7x's two TensorCores
    # both get work on the "parallel" grid axis.
    b16 = _round_up(B, MIN_TB)
    tb = MIN_TB if b16 <= MIN_TB else min(MAX_TB, _round_up(_cdiv(b16, 2), MIN_TB))
    b_pad = _round_up(B, tb)
    grid = (b_pad // tb,)

    # Feed activations in the MXU operand dtype; no concat / feature padding,
    # only a cheap batch pad so the grid divides evenly.
    xk = jnp.pad(x.astype(cdt), ((0, b_pad - B), (0, 0)))
    ak = jnp.pad(a.astype(cdt), ((0, b_pad - B), (0, 0)))

    # x / a / out tiles move with the batch index; weights & biases use a
    # constant index map so they are fetched once and stay VMEM-resident.
    def const2d(arr):
        return pl.BlockSpec(arr.shape, lambda i: (0, 0))

    out = pl.pallas_call(
        qnetwork_kernel,
        out_shape=jax.ShapeDtypeStruct((b_pad, n_pad), jnp.float32),
        grid=grid,
        in_specs=[
            pl.BlockSpec((tb, obs_dim), lambda i: (i, 0)),   # obs batch tile
            pl.BlockSpec((tb, act_dim), lambda i: (i, 0)),   # act batch tile
            const2d(w1x), const2d(w1a), const2d(b1),
            const2d(w2), const2d(b2),
            const2d(w3), const2d(b3),
        ],
        out_specs=pl.BlockSpec((tb, n_pad), lambda i: (i, 0)),
        compiler_params=pltpu.CompilerParams(
            dimension_semantics=("parallel",)),
    )(xk, ak, w1x, w1a, b1, w2, b2, w3, b3)

    return out[:B, :n_out]


# ---------------------------------------------------------------------------
# Pure-JAX reference with the same matmul dtype strategy as the kernel
# (operands in `compute_dtype`, f32 accumulation, f32 elementwise).
# ---------------------------------------------------------------------------
def qnetwork_reference(x, a, params, compute_dtype=jnp.bfloat16):
    w1, b1, w2, b2, w3, b3 = params
    xa = jnp.concatenate([x, a], axis=1).astype(jnp.float32)

    def dense(h, w, b):
        y = jnp.dot(h.astype(compute_dtype), w.astype(compute_dtype),
                    preferred_element_type=jnp.float32)
        return y + b.reshape(1, -1).astype(jnp.float32)

    h1 = jnp.maximum(dense(xa, w1, b1), 0.0)
    h2 = jnp.maximum(dense(h1, w2, b2), 0.0)
    return dense(h2, w3, b3)


if __name__ == "__main__":
    OBS_DIM, ACT_DIM = 17, 6    # HalfCheetah-like dims

    key = jax.random.PRNGKey(0)
    k_params, k_x, k_a = jax.random.split(key, 3)
    params = init_params(k_params, OBS_DIM, ACT_DIM)

    # (batch, matmul-operand dtype, tolerance): small-batch f32, small-batch bf16,
    # a multi-tile batch (grid of 2) exercising padding + weight residency, and a
    # large batch exercising the 1024-row tiles / 2-step parallel grid.
    cases = (
        (8, jnp.float32, 1e-4),
        (8, jnp.bfloat16, 5e-3),
        (200, jnp.bfloat16, 5e-3),
        (2048, jnp.bfloat16, 5e-3),
    )
    for B, dtype, tol in cases:
        x = jax.random.normal(k_x, (B, OBS_DIM), jnp.float32)
        a = jax.random.normal(k_a, (B, ACT_DIM), jnp.float32)

        padded, n_out = prepare_params(params, OBS_DIM, param_dtype=dtype)
        out = qnetwork_forward(x, a, padded, n_out=n_out)
        out = jax.block_until_ready(out)

        ref = qnetwork_reference(x, a, params, compute_dtype=dtype)
        assert out.shape == (B, 1), (out.shape, B)
        assert jnp.allclose(out, ref, atol=tol, rtol=tol), (
            "mismatch vs reference", B, dtype)

    print("KERNEL_OK")
</pallas_src>

<mosaic_0001>
module attributes {stable_mosaic.version = 11 : i64} {
  func.func @qnetwork_kernel(%arg0: i32, %arg1: memref<16x17xf32, #tpu.memory_space<vmem>>, %arg2: memref<16x6xf32, #tpu.memory_space<vmem>>, %arg3: memref<17x256xf32, #tpu.memory_space<vmem>>, %arg4: memref<6x256xf32, #tpu.memory_space<vmem>>, %arg5: memref<1x256xf32, #tpu.memory_space<vmem>>, %arg6: memref<256x256xf32, #tpu.memory_space<vmem>>, %arg7: memref<1x256xf32, #tpu.memory_space<vmem>>, %arg8: memref<256x8xf32, #tpu.memory_space<vmem>>, %arg9: memref<1x8xf32, #tpu.memory_space<vmem>>, %arg10: memref<16x8xf32, #tpu.memory_space<vmem>>) attributes {dimension_semantics = [#tpu.dimension_semantics<parallel>], iteration_bounds = array<i64: 1>, scalar_prefetch = 0 : i64, scratch_operands = 0 : i64, tpu.core_type = #tpu.core_type<tc>, window_params = [{transform_indices = @transform_0, window_bounds = array<i64: 16, 17>}, {transform_indices = @transform_1, window_bounds = array<i64: 16, 6>}, {pipeline_mode = #tpu.pipeline_mode<synchronous>, transform_indices = @transform_2, window_bounds = array<i64: 17, 256>}, {pipeline_mode = #tpu.pipeline_mode<synchronous>, transform_indices = @transform_3, window_bounds = array<i64: 6, 256>}, {pipeline_mode = #tpu.pipeline_mode<synchronous>, transform_indices = @transform_4, window_bounds = array<i64: 1, 256>}, {pipeline_mode = #tpu.pipeline_mode<synchronous>, transform_indices = @transform_5, window_bounds = array<i64: 256, 256>}, {pipeline_mode = #tpu.pipeline_mode<synchronous>, transform_indices = @transform_6, window_bounds = array<i64: 1, 256>}, {pipeline_mode = #tpu.pipeline_mode<synchronous>, transform_indices = @transform_7, window_bounds = array<i64: 256, 8>}, {pipeline_mode = #tpu.pipeline_mode<synchronous>, transform_indices = @transform_8, window_bounds = array<i64: 1, 8>}, {transform_indices = @transform_9, window_bounds = array<i64: 16, 8>}]} {
    %c0 = arith.constant 0 : index
    %c0_0 = arith.constant 0 : index
    %0 = vector.load %arg1[%c0, %c0_0] : memref<16x17xf32, #tpu.memory_space<vmem>>, vector<16x17xf32>
    %c0_1 = arith.constant 0 : index
    %c0_2 = arith.constant 0 : index
    %1 = vector.load %arg3[%c0_1, %c0_2] : memref<17x256xf32, #tpu.memory_space<vmem>>, vector<17x256xf32>
    %cst = arith.constant dense<0.000000e+00> : vector<16x256xf32>
    %2 = tpu.matmul %0, %1, %cst {dimension_numbers = #tpu.dot_dimension_numbers<[1], [0], [0], [1], [0, 0, 1, 1], [], []>} : vector<16x17xf32>, vector<17x256xf32>, vector<16x256xf32> -> vector<16x256xf32>
    %c0_3 = arith.constant 0 : index
    %c0_4 = arith.constant 0 : index
    %3 = vector.load %arg2[%c0_3, %c0_4] : memref<16x6xf32, #tpu.memory_space<vmem>>, vector<16x6xf32>
    %c0_5 = arith.constant 0 : index
    %c0_6 = arith.constant 0 : index
    %4 = vector.load %arg4[%c0_5, %c0_6] : memref<6x256xf32, #tpu.memory_space<vmem>>, vector<6x256xf32>
    %cst_7 = arith.constant dense<0.000000e+00> : vector<16x256xf32>
    %5 = tpu.matmul %3, %4, %cst_7 {dimension_numbers = #tpu.dot_dimension_numbers<[1], [0], [0], [1], [0, 0, 1, 1], [], []>} : vector<16x6xf32>, vector<6x256xf32>, vector<16x256xf32> -> vector<16x256xf32>
    %6 = arith.addf %2, %5 : vector<16x256xf32>
    %c0_8 = arith.constant 0 : index
    %c0_9 = arith.constant 0 : index
    %7 = vector.load %arg5[%c0_8, %c0_9] : memref<1x256xf32, #tpu.memory_space<vmem>>, vector<1x256xf32>
    %8 = vector.broadcast %7 : vector<1x256xf32> to vector<16x256xf32>
    %9 = arith.addf %6, %8 : vector<16x256xf32>
    %cst_10 = arith.constant 0.000000e+00 : f32
    %10 = vector.broadcast %cst_10 : f32 to vector<16x256xf32>
    %11 = arith.maximumf %9, %10 : vector<16x256xf32>
    %c0_11 = arith.constant 0 : index
    %c0_12 = arith.constant 0 : index
    %12 = vector.load %arg6[%c0_11, %c0_12] : memref<256x256xf32, #tpu.memory_space<vmem>>, vector<256x256xf32>
    %cst_13 = arith.constant dense<0.000000e+00> : vector<16x256xf32>
    %13 = tpu.matmul %11, %12, %cst_13 {dimension_numbers = #tpu.dot_dimension_numbers<[1], [0], [0], [1], [0, 0, 1, 1], [], []>} : vector<16x256xf32>, vector<256x256xf32>, vector<16x256xf32> -> vector<16x256xf32>
    %c0_14 = arith.constant 0 : index
    %c0_15 = arith.constant 0 : index
    %14 = vector.load %arg7[%c0_14, %c0_15] : memref<1x256xf32, #tpu.memory_space<vmem>>, vector<1x256xf32>
    %15 = vector.broadcast %14 : vector<1x256xf32> to vector<16x256xf32>
    %16 = arith.addf %13, %15 : vector<16x256xf32>
    %cst_16 = arith.constant 0.000000e+00 : f32
    %17 = vector.broadcast %cst_16 : f32 to vector<16x256xf32>
    %18 = arith.maximumf %16, %17 : vector<16x256xf32>
    %c0_17 = arith.constant 0 : index
    %c0_18 = arith.constant 0 : index
    %19 = vector.load %arg8[%c0_17, %c0_18] : memref<256x8xf32, #tpu.memory_space<vmem>>, vector<256x8xf32>
    %cst_19 = arith.constant dense<0.000000e+00> : vector<16x8xf32>
    %20 = tpu.matmul %18, %19, %cst_19 {dimension_numbers = #tpu.dot_dimension_numbers<[1], [0], [0], [1], [0, 0, 1, 1], [], []>} : vector<16x256xf32>, vector<256x8xf32>, vector<16x8xf32> -> vector<16x8xf32>
    %c0_20 = arith.constant 0 : index
    %c0_21 = arith.constant 0 : index
    %21 = vector.load %arg9[%c0_20, %c0_21] : memref<1x8xf32, #tpu.memory_space<vmem>>, vector<1x8xf32>
    %22 = vector.broadcast %21 : vector<1x8xf32> to vector<16x8xf32>
    %23 = arith.addf %20, %22 : vector<16x8xf32>
    %c0_22 = arith.constant 0 : index
    %c0_23 = arith.constant 0 : index
    %24 = vector.load %arg10[%c0_22, %c0_23] : memref<16x8xf32, #tpu.memory_space<vmem>>, vector<16x8xf32>
    tpu.vector_store %arg10[%c0_22, %c0_23], %23 {strides = array<i32>} : memref<16x8xf32, #tpu.memory_space<vmem>>, vector<16x8xf32>,
    return
  }
  func.func @transform_0(%arg0: i32) -> (i32, i32) {
    %c0_i32 = arith.constant 0 : i32
    %c0_i32_0 = arith.constant 0 : i32
    return %arg0, %c0_i32 : i32, i32
  }
  func.func @transform_1(%arg0: i32) -> (i32, i32) {
    %c0_i32 = arith.constant 0 : i32
    %c0_i32_0 = arith.constant 0 : i32
    return %arg0, %c0_i32 : i32, i32
  }
  func.func @transform_2(%arg0: i32) -> (i32, i32) {
    %c0_i32 = arith.constant 0 : i32
    %c0_i32_0 = arith.constant 0 : i32
    %c0_i32_1 = arith.constant 0 : i32
    return %c0_i32, %c0_i32_0 : i32, i32
  }
  func.func @transform_3(%arg0: i32) -> (i32, i32) {
    %c0_i32 = arith.constant 0 : i32
    %c0_i32_0 = arith.constant 0 : i32
    %c0_i32_1 = arith.constant 0 : i32
    return %c0_i32, %c0_i32_0 : i32, i32
  }
  func.func @transform_4(%arg0: i32) -> (i32, i32) {
    %c0_i32 = arith.constant 0 : i32
    %c0_i32_0 = arith.constant 0 : i32
    %c0_i32_1 = arith.constant 0 : i32
    return %c0_i32, %c0_i32_0 : i32, i32
  }
  func.func @transform_5(%arg0: i32) -> (i32, i32) {
    %c0_i32 = arith.constant 0 : i32
    %c0_i32_0 = arith.constant 0 : i32
    %c0_i32_1 = arith.constant 0 : i32
    return %c0_i32, %c0_i32_0 : i32, i32
  }
  func.func @transform_6(%arg0: i32) -> (i32, i32) {
    %c0_i32 = arith.constant 0 : i32
    %c0_i32_0 = arith.constant 0 : i32
    %c0_i32_1 = arith.constant 0 : i32
    return %c0_i32, %c0_i32_0 : i32, i32
  }
  func.func @transform_7(%arg0: i32) -> (i32, i32) {
    %c0_i32 = arith.constant 0 : i32
    %c0_i32_0 = arith.constant 0 : i32
    %c0_i32_1 = arith.constant 0 : i32
    return %c0_i32, %c0_i32_0 : i32, i32
  }
  func.func @transform_8(%arg0: i32) -> (i32, i32) {
    %c0_i32 = arith.constant 0 : i32
    %c0_i32_0 = arith.constant 0 : i32
    %c0_i32_1 = arith.constant 0 : i32
    return %c0_i32, %c0_i32_0 : i32, i32
  }
  func.func @transform_9(%arg0: i32) -> (i32, i32) {
    %c0_i32 = arith.constant 0 : i32
    %c0_i32_0 = arith.constant 0 : i32
    return %arg0, %c0_i32 : i32, i32
  }
}

</mosaic_0001>

<bundles_post_ra>
// kernel: qnetwork_forward.1
= control target key start
LH: loop header
LB: loop body
LE: loop exit
PB: predicated region body
PF: predicated region fallthrough
CT: control target
= control target key end

     0   :  { %14 = vsyncpa [#allocation3], 0  ;;  %s718_s30 = smov [#allocation2]   ;;  %s937_s0 = inlined_call_operand.vmem [shape: f32[16,17], index: 0, kind: input, shape index: {}]   ;;  %s938_s1 = inlined_call_operand.vmem [shape: f32[16,6], index: 1, kind: input, shape index: {}]   ;;  %s939_s2 = inlined_call_operand.vmem [shape: f32[17,256], index: 2, kind: input, shape index: {}]   ;;  %s940_s3 = inlined_call_operand.vmem [shape: f32[6,256], index: 3, kind: input, shape index: {}]   ;;  %s941_s4 = inlined_call_operand.vmem [shape: f32[1,256], index: 4, kind: input, shape index: {}]   ;;  %s942_s5 = inlined_call_operand.hbm [shape: f32[256,256], index: 5, kind: input, shape index: {}]   ;;  %s943_s6 = inlined_call_operand.vmem [shape: f32[1,256], index: 6, kind: input, shape index: {}]   ;;  %s944_s7 = inlined_call_operand.vmem [shape: f32[256,8], index: 7, kind: input, shape index: {}]   ;;  %s945_s8 = inlined_call_operand.vmem [shape: f32[1,8], index: 8, kind: input, shape index: {}]   ;;  %s946_s9 = inlined_call_operand.vmem [shape: f32[16,8], index: 9, kind: output, shape index: {}]  }
   0x1   :  { %s30_s10 = sshll.u32 %s718_s30, 4  ;;  %s694_s13 = scalar_lea.hbm %s942_s5, 8192  ;;  %s31_s10 = int_to_ptr.vmem [resolvable:$true] %s30_s10 }
   0x2   :  { %p695_p0 = scmp.ne.s32.totalorder %s942_s5, %s694_s13  ;;  %p698_p1 = scmp.lt.u32.totalorder %s694_s13, %s942_s5 }
   0x4   :  { %p700_p2 = pnand %p698_p1, %p695_p0 }
   0x6   :  { %703 = shalt.err (!%p700_p2)
}
   0x7   :  { %s704_s18 = scalar_lea.vmem %s31_s10, 8192  ;;  %p709_p4 = scmp.lt.s32.totalorder %s31_s10, %s31_s10 }
   0x8   :  { %p705_p3 = scmp.ne.s32.totalorder %s31_s10, %s704_s18  ;;  %p710_p5 = scmp.lt.s32.totalorder %s704_s18, %s704_s18 }
   0xa   :  { %p711_p6 = por %p710_p5, %p709_p4 }
   0xc   :  { %p712_p7 = pnand %p711_p6, %p705_p3 }
   0xe   :  { %715 = shalt.err (!%p712_p7)
}
   0xf   :  { %s719_s19 = smov 256   ;;  %s720_s20 = smov 16  }
  0x10   :  { %36 = dma.hbm_to_vmem [thread:$0]  %s942_s5, 8192, %s31_s10, [#allocation3], %s719_s19, %s719_s19, %s720_s20  }
  0x11   :  { %716 = dma.done.wait [#allocation3], 8192  }
  0x12   :  { %717 = vsyncadd [#allocation3], 4294959104  ;;  %v721_v0 = vmov 0.0   ;;  %vm65_vm0 = vcmask 1045504   ;;  %v57_v1 = vld [vmem:[%s940_s3 + $0x8] sm:$0x3f] }
  0x13   :  { %136 = vmatprep.mubr.f32.mxu0 %v721_v0  ;;  %v56_v2 = vld [vmem:[%s940_s3] sm:$0x3f]  ;;  %vm58_vm1 = vcmask 48128   ;;  %539 = vmatprep.subr.msk.mxu0 %vm65_vm0, %v57_v1  ;;  %v49_v4 = vld [vmem:[%s939_s2 + $0x8] sm:$0xff]  ;;  %v51_v5 = vld [vmem:[%s939_s2 + $0x18] sm:$0xff]  ;;  %vm156_vm2 = vcmask 1040384  }
  0x14   :  { %v54_v3 = vld [vmem:[%s938_s1] sm:$0xff]  ;;  %540 = vmatpush1.msk.msra.mxu0 %vm65_vm0, %v56_v2  ;;  %v586_v7 = vpack.c.bf16 %v51_v5, %v49_v4  ;;  %v50_v8 = vld [vmem:[%s939_s2 + $0x10] sm:$0xff]  ;;  %v55_v10 = vld [vmem:[%s938_s1 + $0x8] sm:$0xff]  ;;  %vm149_vm3 = vcmask 138240   ;;  %vm531_vm4 = vcmask 64512  }
  0x15   :  { %v48_v6 = vld [vmem:[%s939_s2] sm:$0xff]  ;;  %541 = vmatmul.mubr.msk.f32.vlgmr.msra.gmra.mrb[0].mxu0 %vm58_vm1, %v54_v3  ;;  %v53_v11 = vld [vmem:[%s939_s2 + $0x28] sm:$0x1]  ;;  %v263_v14 = vld [vmem:[#allocation2 + $0x18] sm:$0xff] }
  0x16   :  { %v588_v9 = vpack.c.bf16 %v50_v8, %v48_v6  ;;  %587 = vmatprep.subr.bf16.mxu0 %v586_v7  ;;  %142 = vmatprep.mubr.f32.mxu0 %v721_v0  ;;  %v52_v12 = vld [vmem:[%s939_s2 + $0x20] sm:$0x1]  ;;  %v261_v13 = vld [vmem:[#allocation2 + $0x8] sm:$0xff]  ;;  %v262_v17 = vld [vmem:[#allocation2 + $0x10] sm:$0xff] }
  0x17   :  { %v260_v15 = vld [vmem:[#allocation2] sm:$0xff]  ;;  %v590_v16 = vpack.c.bf16 %v263_v14, %v261_v13  ;;  %v265_v18 = vld [vmem:[#allocation2 + $0x28] sm:$0xff]  ;;  %v267_v19 = vld [vmem:[#allocation2 + $0x38] sm:$0xff] }
  0x18   :  { %589 = vmatpush1.bf16.msra.mxu0 %v588_v9  ;;  %v592_v20 = vpack.c.bf16 %v262_v17, %v260_v15  ;;  %v594_v21 = vpack.c.bf16 %v267_v19, %v265_v18  ;;  %v264_v22 = vld [vmem:[#allocation2 + $0x20] sm:$0xff]  ;;  %v266_v23 = vld [vmem:[#allocation2 + $0x30] sm:$0xff]  ;;  %v269_v24 = vld [vmem:[#allocation2 + $0x48] sm:$0xff] }
  0x19   :  { %543 = vmatprep.subr.msk.mxu0 %vm156_vm2, %v53_v11  ;;  %542 = vmatmul.mubr.msk.f32.gmra.mrb[2].mxu0 %vm58_vm1, %v55_v10  ;;  %v271_v25 = vld [vmem:[#allocation2 + $0x58] sm:$0xff]  ;;  %v46_v26 = vld [vmem:[%s937_s0] sm:$0xff]  ;;  %v596_v27 = vpack.c.bf16 %v266_v23, %v264_v22  ;;  %v270_v30 = vld [vmem:[#allocation2 + $0x50] sm:$0xff] }
  0x1a   :  { %591 = vmatprep.subr.bf16.mxu1 %v590_v16  ;;  %227 = vmatprep.mubr.f32.mxu0 %v721_v0  ;;  %v598_v28 = vpack.c.bf16 %v271_v25, %v269_v24  ;;  %v268_v29 = vld [vmem:[#allocation2 + $0x40] sm:$0xff]  ;;  %v273_v31 = vld [vmem:[#allocation2 + $0x68] sm:$0xff]  ;;  %v275_v32 = vld [vmem:[#allocation2 + $0x78] sm:$0xff] }
  0x1b   :  { %593 = vmatpush1.bf16.msra.mxu1 %v592_v20  ;;  %v47_v33 = vld [vmem:[%s937_s0 + $0x8] sm:$0xff]  ;;  %v600_v34 = vpack.c.bf16 %v270_v30, %v268_v29  ;;  %v602_v35 = vpack.c.bf16 %v275_v32, %v273_v31  ;;  %v272_v36 = vld [vmem:[#allocation2 + $0x60] sm:$0xff]  ;;  %v274_v37 = vld [vmem:[#allocation2 + $0x70] sm:$0xff] }
  0x1c   :  { %544 = vmatpush1.msk.msra.mxu0 %vm156_vm2, %v52_v12  ;;  %595 = vmatprep.subr.bf16.mxu1 %v594_v21  ;;  %v277_v38 = vld [vmem:[#allocation2 + $0x88] sm:$0xff]  ;;  %v279_v39 = vld [vmem:[#allocation2 + $0x98] sm:$0xff]  ;;  %v604_v40 = vpack.c.bf16 %v274_v37, %v272_v36  ;;  %v276_v42 = vld [vmem:[#allocation2 + $0x80] sm:$0xff] }
  0x1d   :  { %545 = vmatmul.mubr.msk.f32.vlgmr.msra.gmra.mrb[0].mxu0 %vm149_vm3, %v46_v26  ;;  %v606_v41 = vpack.c.bf16 %v279_v39, %v277_v38  ;;  %v278_v43 = vld [vmem:[#allocation2 + $0x90] sm:$0xff]  ;;  %v281_v44 = vld [vmem:[#allocation2 + $0xa8] sm:$0xff]  ;;  %v283_v45 = vld [vmem:[#allocation2 + $0xb8] sm:$0xff] }
  0x1e   :  { %233 = vmatprep.mubr.f32.mxu0 %v721_v0  ;;  %v608_v46 = vpack.c.bf16 %v278_v43, %v276_v42  ;;  %v610_v47 = vpack.c.bf16 %v283_v45, %v281_v44  ;;  %v280_v48 = vld [vmem:[#allocation2 + $0xa0] sm:$0xff]  ;;  %v282_v49 = vld [vmem:[#allocation2 + $0xb0] sm:$0xff]  ;;  %v285_v50 = vld [vmem:[#allocation2 + $0xc8] sm:$0xff] }
  0x1f   :  { %597 = vmatpush1.bf16.msra.mxu1 %v596_v27  ;;  %v287_v51 = vld [vmem:[#allocation2 + $0xd8] sm:$0xff]  ;;  %v612_v52 = vpack.c.bf16 %v282_v49, %v280_v48  ;;  %v284_v54 = vld [vmem:[#allocation2 + $0xc0] sm:$0xff]  ;;  %v286_v55 = vld [vmem:[#allocation2 + $0xd0] sm:$0xff] }
  0x20   :  { %599 = vmatprep.subr.bf16.mxu1 %v598_v28  ;;  %v614_v53 = vpack.c.bf16 %v287_v51, %v285_v50  ;;  %v289_v56 = vld [vmem:[#allocation2 + $0xe8] sm:$0xff]  ;;  %v291_v57 = vld [vmem:[#allocation2 + $0xf8] sm:$0xff]  ;;  %v616_v58 = vpack.c.bf16 %v286_v55, %v284_v54  ;;  %v288_v60 = vld [vmem:[#allocation2 + $0xe0] sm:$0xff] }
  0x21   :  { %546 = vmatmul.mubr.msk.f32.gmra.mrb[2].mxu0 %vm149_vm3, %v47_v33  ;;  %v618_v59 = vpack.c.bf16 %v291_v57, %v289_v56  ;;  %v290_v61 = vld [vmem:[#allocation2 + $0xf0] sm:$0xff]  ;;  %v293_v62 = vld [vmem:[#allocation2 + $0x108] sm:$0xff]  ;;  %v295_v63 = vld [vmem:[#allocation2 + $0x118] sm:$0xff] }
  0x22   :  { %v620_v0 = vpack.c.bf16 %v290_v61, %v288_v60  ;;  %v622_v1 = vpack.c.bf16 %v295_v63, %v293_v62  ;;  %v292_v2 = vld [vmem:[#allocation2 + $0x100] sm:$0xff]  ;;  %v294_v3 = vld [vmem:[#allocation2 + $0x110] sm:$0xff]  ;;  %v297_v4 = vld [vmem:[#allocation2 + $0x128] sm:$0xff] }
  0x23   :  { %601 = vmatpush1.bf16.msra.mxu1 %v600_v34  ;;  %v299_v5 = vld [vmem:[#allocation2 + $0x138] sm:$0xff]  ;;  %v624_v6 = vpack.c.bf16 %v294_v3, %v292_v2  ;;  %v296_v8 = vld [vmem:[#allocation2 + $0x120] sm:$0xff]  ;;  %v298_v9 = vld [vmem:[#allocation2 + $0x130] sm:$0xff] }
  0x24   :  { %603 = vmatprep.subr.bf16.mxu1 %v602_v35  ;;  %v626_v7 = vpack.c.bf16 %v299_v5, %v297_v4  ;;  %v301_v10 = vld [vmem:[#allocation2 + $0x148] sm:$0xff]  ;;  %v303_v11 = vld [vmem:[#allocation2 + $0x158] sm:$0xff]  ;;  %v628_v12 = vpack.c.bf16 %v298_v9, %v296_v8  ;;  %v300_v14 = vld [vmem:[#allocation2 + $0x140] sm:$0xff] }
  0x25   :  { %v630_v13 = vpack.c.bf16 %v303_v11, %v301_v10  ;;  %v302_v15 = vld [vmem:[#allocation2 + $0x150] sm:$0xff]  ;;  %v305_v16 = vld [vmem:[#allocation2 + $0x168] sm:$0xff]  ;;  %v307_v17 = vld [vmem:[#allocation2 + $0x178] sm:$0xff] }
  0x26   :  { %v632_v18 = vpack.c.bf16 %v302_v15, %v300_v14  ;;  %v634_v19 = vpack.c.bf16 %v307_v17, %v305_v16  ;;  %v304_v20 = vld [vmem:[#allocation2 + $0x160] sm:$0xff]  ;;  %v306_v21 = vld [vmem:[#allocation2 + $0x170] sm:$0xff]  ;;  %v309_v22 = vld [vmem:[#allocation2 + $0x188] sm:$0xff] }
  0x27   :  { %605 = vmatpush1.bf16.msra.mxu1 %v604_v40  ;;  %v311_v23 = vld [vmem:[#allocation2 + $0x198] sm:$0xff]  ;;  %v636_v24 = vpack.c.bf16 %v306_v21, %v304_v20  ;;  %v308_v26 = vld [vmem:[#allocation2 + $0x180] sm:$0xff]  ;;  %v310_v27 = vld [vmem:[#allocation2 + $0x190] sm:$0xff] }
  0x28   :  { %607 = vmatprep.subr.bf16.mxu1 %v606_v41  ;;  %v638_v25 = vpack.c.bf16 %v311_v23, %v309_v22  ;;  %v313_v28 = vld [vmem:[#allocation2 + $0x1a8] sm:$0xff]  ;;  %v315_v29 = vld [vmem:[#allocation2 + $0x1b8] sm:$0xff]  ;;  %v640_v30 = vpack.c.bf16 %v310_v27, %v308_v26  ;;  %v312_v32 = vld [vmem:[#allocation2 + $0x1a0] sm:$0xff]  ;;  %v242_v22 = vlaneseq }
  0x29   :  { %v642_v31 = vpack.c.bf16 %v315_v29, %v313_v28  ;;  %v314_v33 = vld [vmem:[#allocation2 + $0x1b0] sm:$0xff]  ;;  %v317_v34 = vld [vmem:[#allocation2 + $0x1c8] sm:$0xff]  ;;  %v319_v35 = vld [vmem:[#allocation2 + $0x1d8] sm:$0xff] }
  0x2a   :  { %v644_v36 = vpack.c.bf16 %v314_v33, %v312_v32  ;;  %v646_v37 = vpack.c.bf16 %v319_v35, %v317_v34  ;;  %v316_v38 = vld [vmem:[#allocation2 + $0x1c0] sm:$0xff]  ;;  %v318_v39 = vld [vmem:[#allocation2 + $0x1d0] sm:$0xff]  ;;  %v321_v41 = vld [vmem:[#allocation2 + $0x1e8] sm:$0xff]  ;;  %v243_v23 = vshrl.u32 %v242_v22, 7 }
  0x2b   :  { %609 = vmatpush1.bf16.msra.mxu1 %v608_v46  ;;  %v648_v40 = vpack.c.bf16 %v318_v39, %v316_v38  ;;  %v323_v42 = vld [vmem:[#allocation2 + $0x1f8] sm:$0xff]  ;;  %v320_v44 = vld [vmem:[#allocation2 + $0x1e0] sm:$0xff]  ;;  %v322_v45 = vld [vmem:[#allocation2 + $0x1f0] sm:$0xff] }
  0x2c   :  { %611 = vmatprep.subr.bf16.mxu1 %v610_v47  ;;  %v650_v43 = vpack.c.bf16 %v323_v42, %v321_v41  ;;  %v652_v46 = vpack.c.bf16 %v322_v45, %v320_v44  ;;  %v433_v47 = vld [vmem:[%s944_s7 + $0x80] sm:$0xff]  ;;  %v434_v48 = vld [vmem:[%s944_s7 + $0x88] sm:$0xff]  ;;  %v419_v56 = vld [vmem:[%s944_s7 + $0x10] sm:$0xff]  ;;  %v248_v26 = vsub.s32 1, %v243_v23 }
  0x2d   :  { %v417_v49 = vld [vmem:[%s944_s7] sm:$0xff]  ;;  %v654_v50 = vpack.c.bf16 %v434_v48, %v433_v47  ;;  %v418_v51 = vld [vmem:[%s944_s7 + $0x8] sm:$0xff]  ;;  %v420_v57 = vld [vmem:[%s944_s7 + $0x18] sm:$0xff] }
  0x2e   :  { %v656_v54 = vpack.c.bf16 %v418_v51, %v417_v49  ;;  %v660_v60 = vpack.c.bf16 %v420_v57, %v419_v56  ;;  %v421_v62 = vld [vmem:[%s944_s7 + $0x20] sm:$0xff]  ;;  %v422_v63 = vld [vmem:[%s944_s7 + $0x28] sm:$0xff]  ;;  %v423_v4 = vld [vmem:[%s944_s7 + $0x30] sm:$0xff] }
  0x2f   :  { %613 = vmatpush1.bf16.msra.mxu1 %v612_v52  ;;  %v435_v52 = vld [vmem:[%s944_s7 + $0x90] sm:$0xff]  ;;  %655 = vmatprep.subr.bf16.mxu0 %v654_v50  ;;  %v664_v2 = vpack.c.bf16 %v422_v63, %v421_v62  ;;  %v424_v5 = vld [vmem:[%s944_s7 + $0x38] sm:$0xff]  ;;  %v425_v10 = vld [vmem:[%s944_s7 + $0x40] sm:$0xff] }
  0x30   :  { %615 = vmatprep.subr.bf16.mxu1 %v614_v53  ;;  %v436_v53 = vld [vmem:[%s944_s7 + $0x98] sm:$0xff]  ;;  %657 = vmatpush3.bf16.msra.mxu0 %v656_v54  ;;  %v668_v8 = vpack.c.bf16 %v424_v5, %v423_v4  ;;  %v426_v11 = vld [vmem:[%s944_s7 + $0x48] sm:$0xff]  ;;  %v427_v16 = vld [vmem:[%s944_s7 + $0x50] sm:$0xff] }
  0x31   :  { %v658_v55 = vpack.c.bf16 %v436_v53, %v435_v52  ;;  %v672_v14 = vpack.c.bf16 %v426_v11, %v425_v10  ;;  %v428_v17 = vld [vmem:[%s944_s7 + $0x58] sm:$0xff]  ;;  %v429_v41 = vld [vmem:[%s944_s7 + $0x60] sm:$0xff]  ;;  %v430_v42 = vld [vmem:[%s944_s7 + $0x68] sm:$0xff] }
  0x32   :  { %v676_v20 = vpack.c.bf16 %v428_v17, %v427_v16  ;;  %v447_v44 = vld [vmem:[%s944_s7 + $0xf0] sm:$0xff]  ;;  %v448_v45 = vld [vmem:[%s944_s7 + $0xf8] sm:$0xff]  ;;  %v324_v50 = vld [vmem:[%s943_s6] sm:$0x3] }
  0x33   :  { %617 = vmatpush1.bf16.msra.mxu1 %v616_v58  ;;  %v437_v58 = vld [vmem:[%s944_s7 + $0xa0] sm:$0xff]  ;;  %659 = vmatprep.subr.bf16.mxu0 %v658_v55  ;;  %v431_v47 = vld [vmem:[%s944_s7 + $0x70] sm:$0xff]  ;;  %v432_v48 = vld [vmem:[%s944_s7 + $0x78] sm:$0xff]  ;;  %v333_v52 = vrot.slane %v324_v50, %v248_v26 }
  0x34   :  { %619 = vmatprep.subr.bf16.mxu1 %v618_v59  ;;  %v438_v59 = vld [vmem:[%s944_s7 + $0xa8] sm:$0xff]  ;;  %661 = vmatpush3.bf16.msra.mxu0 %v660_v60  ;;  %v684_v49 = vpack.c.bf16 %v432_v48, %v431_v47 }
  0x35   :  { %v662_v61 = vpack.c.bf16 %v438_v59, %v437_v58 }
  0x37   :  { %621 = vmatpush1.bf16.msra.mxu1 %v620_v0  ;;  %v439_v0 = vld [vmem:[%s944_s7 + $0xb0] sm:$0xff]  ;;  %663 = vmatprep.subr.bf16.mxu0 %v662_v61 }
  0x38   :  { %623 = vmatprep.subr.bf16.mxu1 %v622_v1  ;;  %v440_v1 = vld [vmem:[%s944_s7 + $0xb8] sm:$0xff]  ;;  %665 = vmatpush3.bf16.msra.mxu0 %v664_v2  ;;  %v547_v2 = vld [vmem:[%s945_s8] ss:$0 sm:$0xff] }
  0x39   :  { %v666_v3 = vpack.c.bf16 %v440_v1, %v439_v0 }
  0x3b   :  { %625 = vmatpush1.bf16.msra.mxu1 %v624_v6  ;;  %v441_v6 = vld [vmem:[%s944_s7 + $0xc0] sm:$0xff]  ;;  %667 = vmatprep.subr.bf16.mxu0 %v666_v3 }
  0x3c   :  { %627 = vmatprep.subr.bf16.mxu1 %v626_v7  ;;  %v442_v7 = vld [vmem:[%s944_s7 + $0xc8] sm:$0xff]  ;;  %669 = vmatpush3.bf16.msra.mxu0 %v668_v8 }
  0x3d   :  { %v670_v9 = vpack.c.bf16 %v442_v7, %v441_v6 }
  0x3f   :  { %629 = vmatpush1.bf16.msra.mxu1 %v628_v12  ;;  %v443_v12 = vld [vmem:[%s944_s7 + $0xd0] sm:$0xff]  ;;  %671 = vmatprep.subr.bf16.mxu0 %v670_v9 }
  0x40   :  { %631 = vmatprep.subr.bf16.mxu1 %v630_v13  ;;  %v444_v13 = vld [vmem:[%s944_s7 + $0xd8] sm:$0xff]  ;;  %673 = vmatpush3.bf16.msra.mxu0 %v672_v14 }
  0x41   :  { %v674_v15 = vpack.c.bf16 %v444_v13, %v443_v12 }
  0x43   :  { %633 = vmatpush1.bf16.msra.mxu1 %v632_v18  ;;  %v445_v18 = vld [vmem:[%s944_s7 + $0xe0] sm:$0xff]  ;;  %675 = vmatprep.subr.bf16.mxu0 %v674_v15 }
  0x44   :  { %635 = vmatprep.subr.bf16.mxu1 %v634_v19  ;;  %v446_v19 = vld [vmem:[%s944_s7 + $0xe8] sm:$0xff]  ;;  %677 = vmatpush3.bf16.msra.mxu0 %v676_v20 }
  0x45   :  { %v678_v21 = vpack.c.bf16 %v446_v19, %v445_v18 }
  0x47   :  { %637 = vmatpush1.bf16.msra.mxu1 %v636_v24  ;;  %679 = vmatprep.subr.bf16.mxu0 %v678_v21  ;;  %v244_v24 = vsub.s32 0, %v243_v23 }
  0x48   :  { %639 = vmatprep.subr.bf16.mxu1 %v638_v25  ;;  %v240_v25 = vld [vmem:[%s941_s4] sm:$0x3] }
  0x49   :  { %v245_v27 = vrot.slane %v240_v25, %v244_v24  ;;  %v249_v28 = vrot.slane %v240_v25, %v248_v26  ;;  %v329_v51 = vrot.slane %v324_v50, %v244_v24 }
  0x4b   :  { %641 = vmatpush1.bf16.msra.mxu1 %v640_v30 }
  0x4c   :  { %643 = vmatprep.subr.bf16.mxu1 %v642_v31 }
  0x4f   :  { %645 = vmatpush1.bf16.msra.mxu1 %v644_v36 }
  0x50   :  { %647 = vmatprep.subr.bf16.mxu1 %v646_v37 }
  0x53   :  { %649 = vmatpush1.bf16.msra.mxu1 %v648_v40 }
  0x54   :  { %651 = vmatprep.subr.bf16.mxu1 %v650_v43  ;;  %v680_v43 = vpack.c.bf16 %v430_v42, %v429_v41 }
  0x56   :  { %681 = vmatpush3.bf16.msra.mxu0 %v680_v43 }
  0x57   :  { %653 = vmatpush1.bf16.msra.mxu1 %v652_v46  ;;  %v682_v46 = vpack.c.bf16 %v448_v45, %v447_v44 }
  0x59   :  { %683 = vmatprep.subr.bf16.mxu0 %v682_v46 }
  0x5a   :  { %685 = vmatpush3.bf16.msra.mxu0 %v684_v49 }
  0xf0   :  { %v229_v29 = vpop.f32.mrb[0].mxu0 }
  0xf1   :  { %v252_v30 = vadd.f32 %v245_v27, %v229_v29  ;;  %v231_v31 = vpop.f32.mrb[1].mxu0 }
  0xf2   :  { %v253_v32 = vadd.f32 %v249_v28, %v231_v31 }
  0xf3   :  { %v256_v35 = vmax.f32 %v252_v30, 0.0 }
  0xf4   :  { %v235_v33 = vpop.f32.mrb[2].mxu0  ;;  %v257_v34 = vmax.f32 %v253_v32, 0.0 }
  0xf5   :  { %v254_v36 = vadd.f32 %v245_v27, %v235_v33  ;;  %v237_v37 = vpop.f32.mrb[3].mxu0 }
  0xf6   :  { %v255_v38 = vadd.f32 %v249_v28, %v237_v37  ;;  %400 = vmatprep.mubr.f32.mxu1 %v257_v34 }
  0xf7   :  { %401 = vmatmul.mubr.f32.vlgmr.msra.gmra.mrb[0].mxu1 %v256_v35  ;;  %v258_v40 = vmax.f32 %v254_v36, 0.0 }
  0xf8   :  { %v259_v39 = vmax.f32 %v255_v38, 0.0 }
  0xfa   :  { %406 = vmatprep.mubr.f32.mxu1 %v259_v39 }
  0xfb   :  { %407 = vmatmul.mubr.f32.gmra.mrb[2].mxu1 %v258_v40 }
 0x1ca   :  { %v402_v53 = vpop.f32.mrb[0].mxu1 }
 0x1cb   :  { %v403_v54 = vadd.f32 %v402_v53, %v329_v51  ;;  %v404_v55 = vpop.f32.mrb[1].mxu1 }
 0x1cc   :  { %v405_v56 = vadd.f32 %v404_v55, %v333_v52 }
 0x1cd   :  { %v413_v59 = vmax.f32 %v403_v54, 0.0 }
 0x1ce   :  { %v414_v57 = vmax.f32 %v405_v56, 0.0  ;;  %v408_v58 = vpop.f32.mrb[2].mxu1 }
 0x1cf   :  { %v409_v60 = vadd.f32 %v408_v58, %v329_v51  ;;  %v410_v61 = vpop.f32.mrb[3].mxu1 }
 0x1d0   :  { %v411_v62 = vadd.f32 %v410_v61, %v333_v52  ;;  %520 = vmatprep.mubr.f32.mxu0 %v414_v57 }
 0x1d1   :  { %521 = vmatmul.mubr.f32.vlgmr.msra.gmra.mrb[4].mxu0 %v413_v59  ;;  %v415_v0 = vmax.f32 %v409_v60, 0.0 }
 0x1d2   :  { %v416_v63 = vmax.f32 %v411_v62, 0.0 }
 0x1d4   :  { %525 = vmatprep.mubr.f32.mxu0 %v416_v63 }
 0x1d5   :  { %526 = vmatmul.mubr.f32.gmra.mrb[6].mxu0 %v415_v0 }
 0x2a4   :  { %v580_v1 = vpop.f32.mrb[4].mxu0 }
 0x2a5   :  { %v581_v3 = vpop.f32.mrb[5].mxu0 }
 0x2a6   :  { %v582_v4 = vadd.f32 %v581_v3, %v580_v1 }
 0x2a8   :  { %v523_v5 = vadd.f32 %v582_v4, %v547_v2  ;;  %v583_v6 = vpop.f32.mrb[6].mxu0 }
 0x2a9   :  { %v584_v7 = vpop.f32.mrb[7].mxu0 }
 0x2aa   :  { %532 = vst.msk [vmem:[%s946_s9] sm:$0xff] %vm531_vm4, %v523_v5  ;;  %v585_v8 = vadd.f32 %v584_v7, %v583_v6 }
 0x2ac   :  { %v528_v9 = vadd.f32 %v585_v8, %v547_v2 }
 0x2ae   :  { %533 = vst.msk [vmem:[%s946_s9 + $0x8] sm:$0xff] %vm531_vm4, %v528_v9 }
 0x2af   :  { %538 = vsyncpa [#allocation3], 1 }

</bundles_post_ra>
